<compile_context>
chip_gen: v5e
topology: v5e:2x2
jax: 0.10.0
libtpu: 0.0.40
codegen_flags: <defaults>
</compile_context>

<pallas_src>
from functools import partial

import numpy as np
import jax
import jax.numpy as jnp
from jax.experimental import pallas as pl
from jax.experimental.pallas import tpu as pltpu

BN_EPS = 1e-5
LANE = 128


def _round_up(x, m):
    return (x + m - 1) // m * m


def _choose_tb(B, tb_max):
    """Batch tile: as large as possible, but keep >=2 grid blocks for v7x."""
    Bp = _round_up(B, 8)
    if Bp <= 16:
        return Bp
    tb = min(tb_max, Bp)
    if _round_up(Bp, tb) // tb < 2:          # single block would cover the batch
        tb = _round_up((Bp + 1) // 2, 8)     # split so both TensorCores get work
    return tb


def mlp_kernel(x_ref, w1_ref, b1_ref, w2_ref, b2_ref, w3_ref, b3_ref, o_ref):
    """Fused 3-layer MLP (BN pre-folded). bf16 MXU matmuls, f32 accumulation."""
    x = x_ref[...]                                                  # (TB, D) bf16

    # layer 1: Linear(+folded BN) -> ReLU   (Dropout is identity in eval mode)
    h = jnp.dot(x, w1_ref[...], preferred_element_type=jnp.float32) + b1_ref[...]
    h = jnp.maximum(h, 0.0)

    # layer 2: Linear(+folded BN) -> ReLU
    h = jnp.dot(h.astype(jnp.bfloat16), w2_ref[...],
                preferred_element_type=jnp.float32) + b2_ref[...]
    h = jnp.maximum(h, 0.0)

    # layer 3: classifier head (output padded to a 128-lane slab by the wrapper)
    o_ref[...] = (jnp.dot(h.astype(jnp.bfloat16), w3_ref[...],
                          preferred_element_type=jnp.float32)
                  + b3_ref[...]).astype(o_ref.dtype)


def _fold_and_pad(x_nchw, params, num_classes, tb_max):
    """Fold BN into Linears, pad batch / output lanes, cast operands to bf16."""
    (w1, b1, g1, beta1, m1, v1,
     w2, b2, g2, beta2, m2, v2,
     w3, b3) = params

    B = x_nchw.shape[0]
    # Cast BEFORE padding; under jit the reshape/cast/pad fuse (no extra f32 copies).
    x2d = x_nchw.reshape(B, -1).astype(jnp.bfloat16)                # (B, D)
    D = x2d.shape[1]
    H = w1.shape[1]

    # Fold eval-mode BatchNorm (running stats) into the preceding Linear.
    s1 = g1 * jax.lax.rsqrt(v1 + BN_EPS)                            # (1, H)
    w1f = w1 * s1
    b1f = (b1 - m1) * s1 + beta1
    s2 = g2 * jax.lax.rsqrt(v2 + BN_EPS)
    w2f = w2 * s2
    b2f = (b2 - m2) * s2 + beta2

    Npad = _round_up(num_classes, LANE)       # lane-dense output slab
    TB = _choose_tb(B, tb_max)                # batch tile (sublane multiple)
    Bpad = _round_up(B, TB)

    x_p = jnp.pad(x2d, ((0, Bpad - B), (0, 0)))         # pad batch only; K unpadded
    w3_p = jnp.pad(w3, ((0, 0), (0, Npad - num_classes)))
    b3_p = jnp.pad(b3, ((0, 0), (0, Npad - num_classes)))

    operands = (x_p,
                w1f.astype(jnp.bfloat16), b1f.astype(jnp.float32),
                w2f.astype(jnp.bfloat16), b2f.astype(jnp.float32),
                w3_p.astype(jnp.bfloat16), b3_p.astype(jnp.float32))
    dims = dict(B=B, Bpad=Bpad, TB=TB, D=D, H=H, Npad=Npad)
    return operands, dims


@partial(jax.jit, static_argnums=(2, 3))
def mlp_forward(x_nchw, params, num_classes, tb_max=1024):
    """Flatten NCHW input, fold BN, and run the fused Pallas MLP kernel."""
    ops, d = _fold_and_pad(x_nchw, params, num_classes, tb_max)
    TB, Bpad, D, H, Npad = d["TB"], d["Bpad"], d["D"], d["H"], d["Npad"]
    nb = Bpad // TB

    flops = 2 * Bpad * (D * H + H * H + H * Npad)
    bytes_accessed = sum(int(np.prod(a.shape)) * a.dtype.itemsize for a in ops) \
                     + Bpad * Npad * 2                               # bf16 output

    out = pl.pallas_call(
        mlp_kernel,
        out_shape=jax.ShapeDtypeStruct((Bpad, Npad), jnp.bfloat16),
        grid=(nb,),
        in_specs=[
            pl.BlockSpec((TB, D), lambda i: (i, 0)),      # x tile (pipelined)
            pl.BlockSpec((D, H), lambda i: (0, 0)),       # w1 (VMEM resident)
            pl.BlockSpec((1, H), lambda i: (0, 0)),       # b1
            pl.BlockSpec((H, H), lambda i: (0, 0)),       # w2
            pl.BlockSpec((1, H), lambda i: (0, 0)),       # b2
            pl.BlockSpec((H, Npad), lambda i: (0, 0)),    # w3 (lane-padded)
            pl.BlockSpec((1, Npad), lambda i: (0, 0)),    # b3 (lane-padded)
        ],
        out_specs=pl.BlockSpec((TB, Npad), lambda i: (i, 0)),
        compiler_params=pltpu.CompilerParams(
            dimension_semantics=("parallel",)),
        cost_estimate=pl.CostEstimate(flops=flops, transcendentals=0,
                                      bytes_accessed=bytes_accessed),
    )(*ops)

    return out[:d["B"], :num_classes]


def reference_forward_matched(x_nchw, params, num_classes, tb_max=1024):
    """Pure-JAX reference with identical folding/bf16-operand/bf16-output numerics."""
    ops, d = _fold_and_pad(x_nchw, params, num_classes, tb_max)
    xb, w1b, b1f, w2b, b2f, w3b, b3p = ops
    h = jnp.dot(xb, w1b, preferred_element_type=jnp.float32) + b1f
    h = jnp.maximum(h, 0.0)
    h = jnp.dot(h.astype(jnp.bfloat16), w2b, preferred_element_type=jnp.float32) + b2f
    h = jnp.maximum(h, 0.0)
    y = jnp.dot(h.astype(jnp.bfloat16), w3b, preferred_element_type=jnp.float32) + b3p
    return y.astype(jnp.bfloat16)[:d["B"], :num_classes]


def reference_forward_f32(x_nchw, params):
    """Pure f32 eval-mode reference (PyTorch semantics, no folding / no bf16)."""
    (w1, b1, g1, beta1, m1, v1,
     w2, b2, g2, beta2, m2, v2,
     w3, b3) = params
    x = x_nchw.reshape(x_nchw.shape[0], -1)
    h = x @ w1 + b1
    h = (h - m1) / jnp.sqrt(v1 + BN_EPS) * g1 + beta1
    h = jnp.maximum(h, 0.0)
    h = h @ w2 + b2
    h = (h - m2) / jnp.sqrt(v2 + BN_EPS) * g2 + beta2
    h = jnp.maximum(h, 0.0)
    return h @ w3 + b3


def init_params(key, in_dim, hidden, num_classes):
    """Deterministic parameters matching the nn.Module shapes.

    Linear weights stored pre-transposed as (in, out); BN params/stats as (1, H).
    """
    ks = jax.random.split(key, 10)

    def linear(kw, kb, fan_in, fan_out):
        bound = 1.0 / np.sqrt(fan_in)
        w = jax.random.uniform(kw, (fan_in, fan_out), jnp.float32, -bound, bound)
        b = jax.random.uniform(kb, (1, fan_out), jnp.float32, -bound, bound)
        return w, b

    w1, b1 = linear(ks[0], ks[1], in_dim, hidden)
    w2, b2 = linear(ks[2], ks[3], hidden, hidden)
    w3, b3 = linear(ks[4], ks[5], hidden, num_classes)

    g1 = jnp.ones((1, hidden), jnp.float32)
    beta1 = jnp.zeros((1, hidden), jnp.float32)
    m1 = 0.1 * jax.random.normal(ks[6], (1, hidden), jnp.float32)
    v1 = 1.0 + 0.1 * jnp.abs(jax.random.normal(ks[7], (1, hidden), jnp.float32))

    g2 = jnp.ones((1, hidden), jnp.float32)
    beta2 = jnp.zeros((1, hidden), jnp.float32)
    m2 = 0.05 * jax.random.normal(ks[8], (1, hidden), jnp.float32)
    v2 = 1.0 + 0.05 * jnp.abs(jax.random.normal(ks[9], (1, hidden), jnp.float32))

    return (w1, b1, g1, beta1, m1, v1,
            w2, b2, g2, beta2, m2, v2,
            w3, b3)


def _to_np_f32(a):
    return np.asarray(jnp.asarray(a, dtype=jnp.float32))


if __name__ == "__main__":
    # Small shapes consistent with the module: image_shape=(3, 8, 8), 10 classes.
    image_shape = (3, 8, 8)
    num_classes = 10
    hidden = 128
    in_dim = int(np.prod(image_shape))

    key = jax.random.PRNGKey(0)
    k_x, k_x2, k_p = jax.random.split(key, 3)
    params = init_params(k_p, in_dim, hidden, num_classes)

    # --- batch=8 (single grid block) ---
    x = jax.random.normal(k_x, (8,) + image_shape, jnp.float32)      # NCHW
    y = jax.block_until_ready(mlp_forward(x, params, num_classes, 1024))

    y_matched = reference_forward_matched(x, params, num_classes, 1024)
    np.testing.assert_allclose(_to_np_f32(y), _to_np_f32(y_matched),
                               rtol=2e-2, atol=2e-2)

    y_f32 = reference_forward_f32(x, params)
    np.testing.assert_allclose(_to_np_f32(y), _to_np_f32(y_f32),
                               rtol=1e-1, atol=1.5e-1)

    # --- batch=64 (exercises the >=2-block "parallel" batch grid) ---
    x2 = jax.random.normal(k_x2, (64,) + image_shape, jnp.float32)
    y2 = jax.block_until_ready(mlp_forward(x2, params, num_classes, 1024))
    y2_matched = reference_forward_matched(x2, params, num_classes, 1024)
    np.testing.assert_allclose(_to_np_f32(y2), _to_np_f32(y2_matched),
                               rtol=2e-2, atol=2e-2)

    print("KERNEL_OK")
</pallas_src>

<mosaic_0001>
module attributes {stable_mosaic.version = 11 : i64} {
  func.func @mlp_kernel(%arg0: i32, %arg1: memref<8x192xbf16, #tpu.memory_space<vmem>>, %arg2: memref<192x128xbf16, #tpu.memory_space<vmem>>, %arg3: memref<1x128xf32, #tpu.memory_space<vmem>>, %arg4: memref<128x128xbf16, #tpu.memory_space<vmem>>, %arg5: memref<1x128xf32, #tpu.memory_space<vmem>>, %arg6: memref<128x128xbf16, #tpu.memory_space<vmem>>, %arg7: memref<1x128xf32, #tpu.memory_space<vmem>>, %arg8: memref<8x128xbf16, #tpu.memory_space<vmem>>) attributes {dimension_semantics = [#tpu.dimension_semantics<parallel>], iteration_bounds = array<i64: 1>, scalar_prefetch = 0 : i64, scratch_operands = 0 : i64, tpu.core_type = #tpu.core_type<tc>, window_params = [{transform_indices = @transform_0, window_bounds = array<i64: 8, 192>}, {pipeline_mode = #tpu.pipeline_mode<synchronous>, transform_indices = @transform_1, window_bounds = array<i64: 192, 128>}, {pipeline_mode = #tpu.pipeline_mode<synchronous>, transform_indices = @transform_2, window_bounds = array<i64: 1, 128>}, {pipeline_mode = #tpu.pipeline_mode<synchronous>, transform_indices = @transform_3, window_bounds = array<i64: 128, 128>}, {pipeline_mode = #tpu.pipeline_mode<synchronous>, transform_indices = @transform_4, window_bounds = array<i64: 1, 128>}, {pipeline_mode = #tpu.pipeline_mode<synchronous>, transform_indices = @transform_5, window_bounds = array<i64: 128, 128>}, {pipeline_mode = #tpu.pipeline_mode<synchronous>, transform_indices = @transform_6, window_bounds = array<i64: 1, 128>}, {transform_indices = @transform_7, window_bounds = array<i64: 8, 128>}]} {
    %c0 = arith.constant 0 : index
    %c0_0 = arith.constant 0 : index
    %0 = vector.load %arg1[%c0, %c0_0] : memref<8x192xbf16, #tpu.memory_space<vmem>>, vector<8x192xbf16>
    %c0_1 = arith.constant 0 : index
    %c0_2 = arith.constant 0 : index
    %1 = vector.load %arg2[%c0_1, %c0_2] : memref<192x128xbf16, #tpu.memory_space<vmem>>, vector<192x128xbf16>
    %cst = arith.constant dense<0.000000e+00> : vector<8x128xf32>
    %2 = tpu.matmul %0, %1, %cst {dimension_numbers = #tpu.dot_dimension_numbers<[1], [0], [0], [1], [0, 0, 1, 1], [], []>} : vector<8x192xbf16>, vector<192x128xbf16>, vector<8x128xf32> -> vector<8x128xf32>
    %c0_3 = arith.constant 0 : index
    %c0_4 = arith.constant 0 : index
    %3 = vector.load %arg3[%c0_3, %c0_4] : memref<1x128xf32, #tpu.memory_space<vmem>>, vector<1x128xf32>
    %4 = vector.broadcast %3 : vector<1x128xf32> to vector<8x128xf32>
    %5 = arith.addf %2, %4 : vector<8x128xf32>
    %cst_5 = arith.constant 0.000000e+00 : f32
    %6 = vector.broadcast %cst_5 : f32 to vector<8x128xf32>
    %7 = arith.maximumf %5, %6 : vector<8x128xf32>
    %8 = arith.truncf %7 : vector<8x128xf32> to vector<8x128xbf16>
    %c0_6 = arith.constant 0 : index
    %c0_7 = arith.constant 0 : index
    %9 = vector.load %arg4[%c0_6, %c0_7] : memref<128x128xbf16, #tpu.memory_space<vmem>>, vector<128x128xbf16>
    %cst_8 = arith.constant dense<0.000000e+00> : vector<8x128xf32>
    %10 = tpu.matmul %8, %9, %cst_8 {dimension_numbers = #tpu.dot_dimension_numbers<[1], [0], [0], [1], [0, 0, 1, 1], [], []>} : vector<8x128xbf16>, vector<128x128xbf16>, vector<8x128xf32> -> vector<8x128xf32>
    %c0_9 = arith.constant 0 : index
    %c0_10 = arith.constant 0 : index
    %11 = vector.load %arg5[%c0_9, %c0_10] : memref<1x128xf32, #tpu.memory_space<vmem>>, vector<1x128xf32>
    %12 = vector.broadcast %11 : vector<1x128xf32> to vector<8x128xf32>
    %13 = arith.addf %10, %12 : vector<8x128xf32>
    %cst_11 = arith.constant 0.000000e+00 : f32
    %14 = vector.broadcast %cst_11 : f32 to vector<8x128xf32>
    %15 = arith.maximumf %13, %14 : vector<8x128xf32>
    %16 = arith.truncf %15 : vector<8x128xf32> to vector<8x128xbf16>
    %c0_12 = arith.constant 0 : index
    %c0_13 = arith.constant 0 : index
    %17 = vector.load %arg6[%c0_12, %c0_13] : memref<128x128xbf16, #tpu.memory_space<vmem>>, vector<128x128xbf16>
    %cst_14 = arith.constant dense<0.000000e+00> : vector<8x128xf32>
    %18 = tpu.matmul %16, %17, %cst_14 {dimension_numbers = #tpu.dot_dimension_numbers<[1], [0], [0], [1], [0, 0, 1, 1], [], []>} : vector<8x128xbf16>, vector<128x128xbf16>, vector<8x128xf32> -> vector<8x128xf32>
    %c0_15 = arith.constant 0 : index
    %c0_16 = arith.constant 0 : index
    %19 = vector.load %arg7[%c0_15, %c0_16] : memref<1x128xf32, #tpu.memory_space<vmem>>, vector<1x128xf32>
    %20 = vector.broadcast %19 : vector<1x128xf32> to vector<8x128xf32>
    %21 = arith.addf %18, %20 : vector<8x128xf32>
    %22 = arith.truncf %21 : vector<8x128xf32> to vector<8x128xbf16>
    %c0_17 = arith.constant 0 : index
    %c0_18 = arith.constant 0 : index
    %23 = vector.load %arg8[%c0_17, %c0_18] : memref<8x128xbf16, #tpu.memory_space<vmem>>, vector<8x128xbf16>
    tpu.vector_store %arg8[%c0_17, %c0_18], %22 {strides = array<i32>} : memref<8x128xbf16, #tpu.memory_space<vmem>>, vector<8x128xbf16>,
    return
  }
  func.func @transform_0(%arg0: i32) -> (i32, i32) {
    %c0_i32 = arith.constant 0 : i32
    %c0_i32_0 = arith.constant 0 : i32
    return %arg0, %c0_i32 : i32, i32
  }
  func.func @transform_1(%arg0: i32) -> (i32, i32) {
    %c0_i32 = arith.constant 0 : i32
    %c0_i32_0 = arith.constant 0 : i32
    %c0_i32_1 = arith.constant 0 : i32
    return %c0_i32, %c0_i32_0 : i32, i32
  }
  func.func @transform_2(%arg0: i32) -> (i32, i32) {
    %c0_i32 = arith.constant 0 : i32
    %c0_i32_0 = arith.constant 0 : i32
    %c0_i32_1 = arith.constant 0 : i32
    return %c0_i32, %c0_i32_0 : i32, i32
  }
  func.func @transform_3(%arg0: i32) -> (i32, i32) {
    %c0_i32 = arith.constant 0 : i32
    %c0_i32_0 = arith.constant 0 : i32
    %c0_i32_1 = arith.constant 0 : i32
    return %c0_i32, %c0_i32_0 : i32, i32
  }
  func.func @transform_4(%arg0: i32) -> (i32, i32) {
    %c0_i32 = arith.constant 0 : i32
    %c0_i32_0 = arith.constant 0 : i32
    %c0_i32_1 = arith.constant 0 : i32
    return %c0_i32, %c0_i32_0 : i32, i32
  }
  func.func @transform_5(%arg0: i32) -> (i32, i32) {
    %c0_i32 = arith.constant 0 : i32
    %c0_i32_0 = arith.constant 0 : i32
    %c0_i32_1 = arith.constant 0 : i32
    return %c0_i32, %c0_i32_0 : i32, i32
  }
  func.func @transform_6(%arg0: i32) -> (i32, i32) {
    %c0_i32 = arith.constant 0 : i32
    %c0_i32_0 = arith.constant 0 : i32
    %c0_i32_1 = arith.constant 0 : i32
    return %c0_i32, %c0_i32_0 : i32, i32
  }
  func.func @transform_7(%arg0: i32) -> (i32, i32) {
    %c0_i32 = arith.constant 0 : i32
    %c0_i32_0 = arith.constant 0 : i32
    return %arg0, %c0_i32 : i32, i32
  }
}

</mosaic_0001>

<bundles_post_ra>
// kernel: mlp_forward.1
= control target key start
LH: loop header
LB: loop body
LE: loop exit
PB: predicated region body
PF: predicated region fallthrough
CT: control target
= control target key end

     0   :  { %s660_s0 = inlined_call_operand.vmem [shape: bf16[8,192], index: 0, kind: input, shape index: {}]   ;;  %s661_s1 = inlined_call_operand.vmem [shape: bf16[192,128], index: 1, kind: input, shape index: {}]   ;;  %s662_s2 = inlined_call_operand.vmem [shape: f32[1,128], index: 2, kind: input, shape index: {}]   ;;  %s663_s3 = inlined_call_operand.vmem [shape: bf16[128,128], index: 3, kind: input, shape index: {}]   ;;  %s664_s4 = inlined_call_operand.vmem [shape: f32[1,128], index: 4, kind: input, shape index: {}]   ;;  %s665_s5 = inlined_call_operand.vmem [shape: bf16[128,128], index: 5, kind: input, shape index: {}]   ;;  %s666_s6 = inlined_call_operand.vmem [shape: f32[1,128], index: 6, kind: input, shape index: {}]   ;;  %s667_s7 = inlined_call_operand.hbm [shape: bf16[8,128], index: 7, kind: output, shape index: {}]  }
   0x1   :  { %v469_v0 = vld [vmem:[%s661_s1 + $0x38] sm:$0xff]  ;;  %v468_v2 = vld [vmem:[%s661_s1 + $0x30] sm:$0xff]  ;;  %v467_v5 = vld [vmem:[%s661_s1 + $0x28] sm:$0xff] }
   0x2   :  { %v473_v1 = vld [vmem:[%s661_s1 + $0x58] sm:$0xff]  ;;  %139 = vmatpush.bf16.msra.mxu0 %v469_v0  ;;  %v472_v3 = vld [vmem:[%s661_s1 + $0x50] sm:$0xff] }
   0x3   :  { %156 = vmatpush.bf16.msra.mxu1 %v473_v1  ;;  %v481_v4 = vld [vmem:[%s663_s3 + $0x38] sm:$0xff]  ;;  %v480_v6 = vld [vmem:[%s663_s3 + $0x30] sm:$0xff] }
   0x4   :  { %235 = vmatpush.bf16.msra.mxu2 %v481_v4 }
   0x6   :  { %140 = vmatpush.bf16.msra.mxu0 %v468_v2 }
   0x7   :  { %12 = vsyncpa [#allocation3], 0  ;;  %157 = vmatpush.bf16.msra.mxu1 %v472_v3  ;;  %v471_v7 = vld [vmem:[%s661_s1 + $0x48] sm:$0xff]  ;;  %v28_v8 = vld [vmem:[%s660_s0] sm:$0xff]  ;;  %vm135_vm0 = vcmask 523264   ;;  %s520_s14 = smov [#allocation2]  }
   0x8   :  { %v466_v9 = vld [vmem:[%s661_s1 + $0x20] sm:$0xff]  ;;  %v59_v10 = vunpack.c.h.b16 %v28_v8  ;;  %236 = vmatpush.bf16.msra.mxu2 %v480_v6  ;;  %v479_v11 = vld [vmem:[%s663_s3 + $0x28] sm:$0xff]  ;;  %v465_v13 = vld [vmem:[%s661_s1 + $0x18] sm:$0xff]  ;;  %v58_v18 = vunpack.c.l.b16 %v28_v8  ;;  %s338_s15 = sshll.u32 %s520_s14, 4  ;;  %s340_s17 = sshll.u32 %s667_s7, 4  ;;  %s339_s15 = int_to_ptr.vmem [resolvable:$true] %s338_s15  ;;  %s341_s17 = int_to_ptr.hbm [resolvable:$true] %s340_s17 }
   0x9   :  { %v470_v12 = vld [vmem:[%s661_s1 + $0x40] sm:$0xff]  ;;  %v464_v16 = vld [vmem:[%s661_s1 + $0x10] sm:$0xff]  ;;  %v463_v17 = vld [vmem:[%s661_s1 + $0x8] sm:$0xff] }
   0xa   :  { %141 = vmatpush.bf16.msra.mxu0 %v467_v5  ;;  %v61_v14 = vpack.c.b16 %v59_v10, %v59_v10  ;;  %v478_v15 = vld [vmem:[%s663_s3 + $0x20] sm:$0xff]  ;;  %v60_v20 = vpack.c.b16 %v58_v18, %v58_v18  ;;  %v477_v21 = vld [vmem:[%s663_s3 + $0x18] sm:$0xff]  ;;  %v476_v22 = vld [vmem:[%s663_s3 + $0x10] sm:$0xff] }
   0xb   :  { %158 = vmatpush.bf16.msra.mxu1 %v471_v7  ;;  %v462_v19 = vld [vmem:[%s661_s1] sm:$0xff]  ;;  %v475_v23 = vld [vmem:[%s663_s3 + $0x8] sm:$0xff]  ;;  %v489_v25 = vld [vmem:[%s665_s5 + $0x38] sm:$0xff] }
   0xc   :  { %237 = vmatpush.bf16.msra.mxu2 %v479_v11  ;;  %v474_v24 = vld [vmem:[%s663_s3] sm:$0xff]  ;;  %318 = vmatpush.bf16.msra.mxu3 %v489_v25  ;;  %v488_v26 = vld [vmem:[%s665_s5 + $0x30] sm:$0xff]  ;;  %v487_v27 = vld [vmem:[%s665_s5 + $0x28] sm:$0xff] }
   0xd   :  { %v486_v29 = vld [vmem:[%s665_s5 + $0x20] sm:$0xff]  ;;  %v485_v30 = vld [vmem:[%s665_s5 + $0x18] sm:$0xff]  ;;  %v484_v32 = vld [vmem:[%s665_s5 + $0x10] sm:$0xff] }
   0xe   :  { %142 = vmatpush.bf16.msra.mxu0 %v466_v9  ;;  %v491_v33 = vld [vmem:[%s662_s2] ss:$0 sm:$0xff]  ;;  %v483_v40 = vld [vmem:[%s665_s5 + $0x8] sm:$0xff] }
   0xf   :  { %159 = vmatpush.bf16.msra.mxu1 %v470_v12  ;;  %v482_v41 = vld [vmem:[%s665_s5] sm:$0xff] }
  0x10   :  { %238 = vmatpush.bf16.msra.mxu2 %v478_v15  ;;  %319 = vmatpush.bf16.msra.mxu3 %v488_v26  ;;  %v492_v42 = vld [vmem:[%s664_s4] ss:$0 sm:$0xff] }
  0x11   :  { %v493_v48 = vld [vmem:[%s666_s6] ss:$0 sm:$0xff] }
  0x12   :  { %143 = vmatpush.bf16.msra.mxu0 %v465_v13  ;;  %397 = vmatmul.msk.bf16.vlgmr.msra.gmra.mxu1 %vm135_vm0, %v61_v14 }
  0x14   :  { %239 = vmatpush.bf16.msra.mxu2 %v477_v21  ;;  %320 = vmatpush.bf16.msra.mxu3 %v487_v27 }
  0x16   :  { %144 = vmatpush.bf16.msra.mxu0 %v464_v16 }
  0x18   :  { %240 = vmatpush.bf16.msra.mxu2 %v476_v22  ;;  %321 = vmatpush.bf16.msra.mxu3 %v486_v29 }
  0x1a   :  { %145 = vmatpush.bf16.msra.mxu0 %v463_v17 }
  0x1c   :  { %241 = vmatpush.bf16.msra.mxu2 %v475_v23  ;;  %322 = vmatpush.bf16.msra.mxu3 %v485_v30 }
  0x1e   :  { %146 = vmatpush.bf16.msra.mxu0 %v462_v19 }
  0x20   :  { %242 = vmatpush.bf16.msra.mxu2 %v474_v24  ;;  %323 = vmatpush.bf16.msra.mxu3 %v484_v32 }
  0x21   :  { %147 = vmatmul.bf16.vlgmr.msra.gmra.mxu0 %v60_v20 }
  0x24   :  { %324 = vmatpush.bf16.msra.mxu3 %v483_v40 }
  0x28   :  { %325 = vmatpush.bf16.msra.mxu3 %v482_v41 }
  0x8f   :  { %v161_v28 = vpop.f32.mrf.mxu1 }
  0x97   :  { %v163_v31 = vpop.f32.mrf.mxu1 }
  0x9e   :  { %v148_v34 = vpop.f32.mrf.mxu0 }
  0x9f   :  { %v149_v35 = vadd.f32 %v491_v33, %v148_v34 }
  0xa1   :  { %v162_v36 = vadd.f32 %v161_v28, %v149_v35 }
  0xa3   :  { %v165_v37 = vmax.f32 %v162_v36, 0.0 }
  0xa5   :  { %v166_v38 = vpack.c.bf16 %v165_v37, %v165_v37 }
  0xa6   :  { %v150_v39 = vpop.f32.mrf.mxu0 }
  0xa7   :  { %243 = vmatmul.bf16.vlgmr.msra.gmra.mxu2 %v166_v38 }
 0x12a   :  { %v244_v43 = vpop.f32.mrf.mxu2 }
 0x12b   :  { %v245_v44 = vadd.f32 %v492_v42, %v244_v43 }
 0x12d   :  { %v248_v45 = vmax.f32 %v245_v44, 0.0 }
 0x12f   :  { %v249_v46 = vpack.c.bf16 %v248_v45, %v248_v45 }
 0x131   :  { %326 = vmatmul.bf16.vlgmr.msra.gmra.mxu3 %v249_v46 }
 0x132   :  { %v246_v47 = vpop.f32.mrf.mxu2 }
 0x1b4   :  { %v327_v49 = vpop.f32.mrf.mxu3 }
 0x1b5   :  { %v328_v50 = vadd.f32 %v493_v48, %v327_v49 }
 0x1b7   :  { %v331_v51 = vpack.c.bf16 %v328_v50, %v328_v50 }
 0x1b9   :  { %332 = vst [vmem:[#allocation2] sm:$0xf] %v331_v51 }
 0x1ba   :  { %343 = dma.vmem_to_hbm [thread:$0]  %s339_s15, 64, %s341_s17, [#allocation3]  }
 0x1bc   :  { %v329_v52 = vpop.f32.mrf.mxu3 }
 0x1bd   :  { %518 = dma.done.wait [#allocation3], 64  }
 0x1be   :  { %519 = vsyncadd [#allocation3], 4294967232 }
 0x1bf   :  { %348 = vsyncpa [#allocation3], 1 }

</bundles_post_ra>
